<compile_context>
chip_gen: v7x
topology: tpu7x:2x2x1
jax: 0.10.0
libtpu: 0.0.40
codegen_flags: <defaults>
</compile_context>

<pallas_src>
import functools

import jax
import jax.numpy as jnp
from jax.experimental import pallas as pl
from jax.experimental.pallas import tpu as pltpu


def _round_up(x, m):
    return ((x + m - 1) // m) * m


def _vmem_limit_bytes():
    """~85% of this chip's VMEM; safe fallback works on every generation (v7x 64 MiB/TC)."""
    try:
        cap = pltpu.get_tpu_info().vmem_capacity_bytes
        return int(cap * 0.85)
    except Exception:
        return 56 * 1024 * 1024


def _mlp_kernel(x_ref,
                w1_ref, b1_ref,
                w2_ref, b2_ref,
                w3_ref, b3_ref,
                w4_ref, b4_ref,
                o_ref):
    # x_ref: (TILE_M, Hp) bf16 tile; w*: (Hp, Hp) bf16 resident; b*: (1, Hp) f32.
    h = x_ref[...]

    # Layers 1-3: MXU matmul (f32 accumulate), fused bias+ReLU, re-cast to bf16 so the
    # inter-layer intermediate held/spilled is bf16 (halves vst / VMEM scratch traffic).
    h = jnp.maximum(
        jnp.dot(h, w1_ref[...], preferred_element_type=jnp.float32) + b1_ref[...], 0.0
    ).astype(jnp.bfloat16)
    h = jnp.maximum(
        jnp.dot(h, w2_ref[...], preferred_element_type=jnp.float32) + b2_ref[...], 0.0
    ).astype(jnp.bfloat16)
    h = jnp.maximum(
        jnp.dot(h, w3_ref[...], preferred_element_type=jnp.float32) + b3_ref[...], 0.0
    ).astype(jnp.bfloat16)

    # Layer 4: no ReLU, store in output dtype (f32).
    h = jnp.dot(h, w4_ref[...], preferred_element_type=jnp.float32) + b4_ref[...]
    o_ref[...] = h.astype(o_ref.dtype)


@functools.partial(jax.jit, static_argnames=("tile_m",))
def simple_mlp_forward(x, params, *, tile_m=512):
    """x: (B, k, H) float32. params: w1..w4 (H,H) in PyTorch (out,in) layout, b1..b4 (H,)."""
    B, k, H = x.shape
    M = B * k
    out_dtype = x.dtype

    # Lane-dense hidden dim (multiple of 256 -> full MXU passes on v6e/v7x) and
    # sublane-aligned token tile.
    Hp = _round_up(H, 256)
    tile_m = _round_up(min(tile_m, _round_up(M, 8)), 8)
    Mp = _round_up(M, tile_m)

    # Activations: zero-pad and pre-cast to bf16 (kernel computes in bf16 anyway; this
    # halves the per-step HBM read in the memory-bound regime).
    x2d = jnp.pad(x.reshape(M, H), ((0, Mp - M), (0, Hp - H))).astype(jnp.bfloat16)

    # Weights: transpose to (in, out), zero-pad, cast to bf16. Biases: zero-pad, keep f32.
    flat_args = []
    for i in (1, 2, 3, 4):
        w = jnp.pad(params[f"w{i}"].T, ((0, Hp - H), (0, Hp - H))).astype(jnp.bfloat16)
        b = jnp.pad(params[f"b{i}"], (0, Hp - H)).reshape(1, Hp).astype(jnp.float32)
        flat_args.append(w)
        flat_args.append(b)

    grid = (Mp // tile_m,)

    in_specs = [pl.BlockSpec((tile_m, Hp), lambda i: (i, 0))]  # x: tiled over M
    for _ in range(4):
        # Constant block index -> fetched once, resident across all grid steps.
        # Single-buffered (Buffered(1)): no point double-buffering a block that never
        # changes; halves the resident weight VMEM footprint.
        in_specs.append(
            pl.BlockSpec((Hp, Hp), lambda i: (0, 0), pipeline_mode=pl.Buffered(1)))
        in_specs.append(
            pl.BlockSpec((1, Hp), lambda i: (0, 0), pipeline_mode=pl.Buffered(1)))

    cost = pl.CostEstimate(
        flops=8 * Mp * Hp * Hp,                                   # 4 layers x 2*M*H*H
        bytes_accessed=2 * Mp * Hp + 4 * Mp * Hp + 8 * Hp * Hp + 16 * Hp,
        transcendentals=0,
    )

    out = pl.pallas_call(
        _mlp_kernel,
        out_shape=jax.ShapeDtypeStruct((Mp, Hp), out_dtype),
        grid_spec=pltpu.PrefetchScalarGridSpec(
            num_scalar_prefetch=0,
            grid=grid,
            in_specs=in_specs,
            out_specs=pl.BlockSpec((tile_m, Hp), lambda i: (i, 0)),
        ),
        compiler_params=pltpu.CompilerParams(
            dimension_semantics=("parallel",),           # shard M tiles across cores
            vmem_limit_bytes=_vmem_limit_bytes(),        # per-generation VMEM budget
        ),
        cost_estimate=cost,
    )(x2d, *flat_args)

    return out[:M, :H].reshape(B, k, H)


def init_params(hidden_dim, key):
    """Deterministic init mimicking nn.Linear default (uniform(-1/sqrt(in), 1/sqrt(in)))."""
    params = {}
    bound = 1.0 / jnp.sqrt(hidden_dim)
    keys = jax.random.split(key, 8)
    for i in range(4):
        params[f"w{i+1}"] = jax.random.uniform(
            keys[2 * i], (hidden_dim, hidden_dim), jnp.float32, -bound, bound)
        params[f"b{i+1}"] = jax.random.uniform(
            keys[2 * i + 1], (hidden_dim,), jnp.float32, -bound, bound)
    return params


def reference_forward(x, params):
    """Plain-JAX f32 reference matching the PyTorch module."""
    h = x
    for i in (1, 2, 3):
        h = jnp.maximum(h @ params[f"w{i}"].T + params[f"b{i}"], 0.0)
    return h @ params["w4"].T + params["b4"]


if __name__ == "__main__":
    B, k, hidden_dim = 2, 8, 32

    key = jax.random.PRNGKey(0)
    pkey, xkey = jax.random.split(key)
    params = init_params(hidden_dim, pkey)
    x = jax.random.normal(xkey, (B, k, hidden_dim), dtype=jnp.float32)

    # Small tile at demo scale so the M grid (pipelining + both cores) is exercised.
    out = simple_mlp_forward(x, params, tile_m=8)
    out = jax.block_until_ready(out)

    ref = reference_forward(x, params)
    assert out.shape == (B, k, hidden_dim)
    # bf16 activations/weights (f32 accumulate) -> loosened tolerance vs f32 reference.
    assert jnp.allclose(out, ref, atol=5e-2, rtol=5e-2), "mismatch vs reference"

    print("KERNEL_OK")
</pallas_src>

<mosaic_0001>
module attributes {stable_mosaic.version = 11 : i64} {
  func.func @_mlp_kernel(%arg0: i32, %arg1: memref<8x256xbf16, #tpu.memory_space<vmem>>, %arg2: memref<256x256xbf16, #tpu.memory_space<vmem>>, %arg3: memref<1x256xf32, #tpu.memory_space<vmem>>, %arg4: memref<256x256xbf16, #tpu.memory_space<vmem>>, %arg5: memref<1x256xf32, #tpu.memory_space<vmem>>, %arg6: memref<256x256xbf16, #tpu.memory_space<vmem>>, %arg7: memref<1x256xf32, #tpu.memory_space<vmem>>, %arg8: memref<256x256xbf16, #tpu.memory_space<vmem>>, %arg9: memref<1x256xf32, #tpu.memory_space<vmem>>, %arg10: memref<8x256xf32, #tpu.memory_space<vmem>>) attributes {dimension_semantics = [#tpu.dimension_semantics<parallel>], iteration_bounds = array<i64: 2>, scalar_prefetch = 0 : i64, scratch_operands = 0 : i64, tpu.core_type = #tpu.core_type<tc>, window_params = [{transform_indices = @transform_0, window_bounds = array<i64: 8, 256>}, {pipeline_mode = #tpu.pipeline_mode<synchronous>, transform_indices = @transform_1, window_bounds = array<i64: 256, 256>}, {pipeline_mode = #tpu.pipeline_mode<synchronous>, transform_indices = @transform_2, window_bounds = array<i64: 1, 256>}, {pipeline_mode = #tpu.pipeline_mode<synchronous>, transform_indices = @transform_3, window_bounds = array<i64: 256, 256>}, {pipeline_mode = #tpu.pipeline_mode<synchronous>, transform_indices = @transform_4, window_bounds = array<i64: 1, 256>}, {pipeline_mode = #tpu.pipeline_mode<synchronous>, transform_indices = @transform_5, window_bounds = array<i64: 256, 256>}, {pipeline_mode = #tpu.pipeline_mode<synchronous>, transform_indices = @transform_6, window_bounds = array<i64: 1, 256>}, {pipeline_mode = #tpu.pipeline_mode<synchronous>, transform_indices = @transform_7, window_bounds = array<i64: 256, 256>}, {pipeline_mode = #tpu.pipeline_mode<synchronous>, transform_indices = @transform_8, window_bounds = array<i64: 1, 256>}, {transform_indices = @transform_9, window_bounds = array<i64: 8, 256>}]} {
    %c0 = arith.constant 0 : index
    %c0_0 = arith.constant 0 : index
    %0 = vector.load %arg1[%c0, %c0_0] : memref<8x256xbf16, #tpu.memory_space<vmem>>, vector<8x256xbf16>
    %c0_1 = arith.constant 0 : index
    %c0_2 = arith.constant 0 : index
    %1 = vector.load %arg2[%c0_1, %c0_2] : memref<256x256xbf16, #tpu.memory_space<vmem>>, vector<256x256xbf16>
    %cst = arith.constant dense<0.000000e+00> : vector<8x256xf32>
    %2 = tpu.matmul %0, %1, %cst {dimension_numbers = #tpu.dot_dimension_numbers<[1], [0], [0], [1], [0, 0, 1, 1], [], []>} : vector<8x256xbf16>, vector<256x256xbf16>, vector<8x256xf32> -> vector<8x256xf32>
    %c0_3 = arith.constant 0 : index
    %c0_4 = arith.constant 0 : index
    %3 = vector.load %arg3[%c0_3, %c0_4] : memref<1x256xf32, #tpu.memory_space<vmem>>, vector<1x256xf32>
    %4 = vector.broadcast %3 : vector<1x256xf32> to vector<8x256xf32>
    %5 = arith.addf %2, %4 : vector<8x256xf32>
    %cst_5 = arith.constant 0.000000e+00 : f32
    %6 = vector.broadcast %cst_5 : f32 to vector<8x256xf32>
    %7 = arith.maximumf %5, %6 : vector<8x256xf32>
    %8 = arith.truncf %7 : vector<8x256xf32> to vector<8x256xbf16>
    %c0_6 = arith.constant 0 : index
    %c0_7 = arith.constant 0 : index
    %9 = vector.load %arg4[%c0_6, %c0_7] : memref<256x256xbf16, #tpu.memory_space<vmem>>, vector<256x256xbf16>
    %cst_8 = arith.constant dense<0.000000e+00> : vector<8x256xf32>
    %10 = tpu.matmul %8, %9, %cst_8 {dimension_numbers = #tpu.dot_dimension_numbers<[1], [0], [0], [1], [0, 0, 1, 1], [], []>} : vector<8x256xbf16>, vector<256x256xbf16>, vector<8x256xf32> -> vector<8x256xf32>
    %c0_9 = arith.constant 0 : index
    %c0_10 = arith.constant 0 : index
    %11 = vector.load %arg5[%c0_9, %c0_10] : memref<1x256xf32, #tpu.memory_space<vmem>>, vector<1x256xf32>
    %12 = vector.broadcast %11 : vector<1x256xf32> to vector<8x256xf32>
    %13 = arith.addf %10, %12 : vector<8x256xf32>
    %cst_11 = arith.constant 0.000000e+00 : f32
    %14 = vector.broadcast %cst_11 : f32 to vector<8x256xf32>
    %15 = arith.maximumf %13, %14 : vector<8x256xf32>
    %16 = arith.truncf %15 : vector<8x256xf32> to vector<8x256xbf16>
    %c0_12 = arith.constant 0 : index
    %c0_13 = arith.constant 0 : index
    %17 = vector.load %arg6[%c0_12, %c0_13] : memref<256x256xbf16, #tpu.memory_space<vmem>>, vector<256x256xbf16>
    %cst_14 = arith.constant dense<0.000000e+00> : vector<8x256xf32>
    %18 = tpu.matmul %16, %17, %cst_14 {dimension_numbers = #tpu.dot_dimension_numbers<[1], [0], [0], [1], [0, 0, 1, 1], [], []>} : vector<8x256xbf16>, vector<256x256xbf16>, vector<8x256xf32> -> vector<8x256xf32>
    %c0_15 = arith.constant 0 : index
    %c0_16 = arith.constant 0 : index
    %19 = vector.load %arg7[%c0_15, %c0_16] : memref<1x256xf32, #tpu.memory_space<vmem>>, vector<1x256xf32>
    %20 = vector.broadcast %19 : vector<1x256xf32> to vector<8x256xf32>
    %21 = arith.addf %18, %20 : vector<8x256xf32>
    %cst_17 = arith.constant 0.000000e+00 : f32
    %22 = vector.broadcast %cst_17 : f32 to vector<8x256xf32>
    %23 = arith.maximumf %21, %22 : vector<8x256xf32>
    %24 = arith.truncf %23 : vector<8x256xf32> to vector<8x256xbf16>
    %c0_18 = arith.constant 0 : index
    %c0_19 = arith.constant 0 : index
    %25 = vector.load %arg8[%c0_18, %c0_19] : memref<256x256xbf16, #tpu.memory_space<vmem>>, vector<256x256xbf16>
    %cst_20 = arith.constant dense<0.000000e+00> : vector<8x256xf32>
    %26 = tpu.matmul %24, %25, %cst_20 {dimension_numbers = #tpu.dot_dimension_numbers<[1], [0], [0], [1], [0, 0, 1, 1], [], []>} : vector<8x256xbf16>, vector<256x256xbf16>, vector<8x256xf32> -> vector<8x256xf32>
    %c0_21 = arith.constant 0 : index
    %c0_22 = arith.constant 0 : index
    %27 = vector.load %arg9[%c0_21, %c0_22] : memref<1x256xf32, #tpu.memory_space<vmem>>, vector<1x256xf32>
    %28 = vector.broadcast %27 : vector<1x256xf32> to vector<8x256xf32>
    %29 = arith.addf %26, %28 : vector<8x256xf32>
    %c0_23 = arith.constant 0 : index
    %c0_24 = arith.constant 0 : index
    %30 = vector.load %arg10[%c0_23, %c0_24] : memref<8x256xf32, #tpu.memory_space<vmem>>, vector<8x256xf32>
    tpu.vector_store %arg10[%c0_23, %c0_24], %29 {strides = array<i32>} : memref<8x256xf32, #tpu.memory_space<vmem>>, vector<8x256xf32>,
    return
  }
  func.func @transform_0(%arg0: i32) -> (i32, i32) {
    %c0_i32 = arith.constant 0 : i32
    %c0_i32_0 = arith.constant 0 : i32
    return %arg0, %c0_i32 : i32, i32
  }
  func.func @transform_1(%arg0: i32) -> (i32, i32) {
    %c0_i32 = arith.constant 0 : i32
    %c0_i32_0 = arith.constant 0 : i32
    %c0_i32_1 = arith.constant 0 : i32
    return %c0_i32, %c0_i32_0 : i32, i32
  }
  func.func @transform_2(%arg0: i32) -> (i32, i32) {
    %c0_i32 = arith.constant 0 : i32
    %c0_i32_0 = arith.constant 0 : i32
    %c0_i32_1 = arith.constant 0 : i32
    return %c0_i32, %c0_i32_0 : i32, i32
  }
  func.func @transform_3(%arg0: i32) -> (i32, i32) {
    %c0_i32 = arith.constant 0 : i32
    %c0_i32_0 = arith.constant 0 : i32
    %c0_i32_1 = arith.constant 0 : i32
    return %c0_i32, %c0_i32_0 : i32, i32
  }
  func.func @transform_4(%arg0: i32) -> (i32, i32) {
    %c0_i32 = arith.constant 0 : i32
    %c0_i32_0 = arith.constant 0 : i32
    %c0_i32_1 = arith.constant 0 : i32
    return %c0_i32, %c0_i32_0 : i32, i32
  }
  func.func @transform_5(%arg0: i32) -> (i32, i32) {
    %c0_i32 = arith.constant 0 : i32
    %c0_i32_0 = arith.constant 0 : i32
    %c0_i32_1 = arith.constant 0 : i32
    return %c0_i32, %c0_i32_0 : i32, i32
  }
  func.func @transform_6(%arg0: i32) -> (i32, i32) {
    %c0_i32 = arith.constant 0 : i32
    %c0_i32_0 = arith.constant 0 : i32
    %c0_i32_1 = arith.constant 0 : i32
    return %c0_i32, %c0_i32_0 : i32, i32
  }
  func.func @transform_7(%arg0: i32) -> (i32, i32) {
    %c0_i32 = arith.constant 0 : i32
    %c0_i32_0 = arith.constant 0 : i32
    %c0_i32_1 = arith.constant 0 : i32
    return %c0_i32, %c0_i32_0 : i32, i32
  }
  func.func @transform_8(%arg0: i32) -> (i32, i32) {
    %c0_i32 = arith.constant 0 : i32
    %c0_i32_0 = arith.constant 0 : i32
    %c0_i32_1 = arith.constant 0 : i32
    return %c0_i32, %c0_i32_0 : i32, i32
  }
  func.func @transform_9(%arg0: i32) -> (i32, i32) {
    %c0_i32 = arith.constant 0 : i32
    %c0_i32_0 = arith.constant 0 : i32
    return %arg0, %c0_i32 : i32, i32
  }
}

</mosaic_0001>

<bundles_post_ra>
// kernel: simple_mlp_forward.1
= control target key start
LH: loop header
LB: loop body
LE: loop exit
PB: predicated region body
PF: predicated region fallthrough
CT: control target
= control target key end

     0   :  { %s1793_s30 = smov 0   ;;  %s2228_s0 = inlined_call_operand.vmem [shape: bf16[16,256], index: 0, kind: input, shape index: {}]   ;;  %s2229_s1 = inlined_call_operand.vmem [shape: bf16[256,256], index: 1, kind: input, shape index: {}]   ;;  %s2230_s2 = inlined_call_operand.vmem [shape: f32[1,256], index: 2, kind: input, shape index: {}]   ;;  %s2231_s3 = inlined_call_operand.vmem [shape: bf16[256,256], index: 3, kind: input, shape index: {}]   ;;  %s2232_s4 = inlined_call_operand.vmem [shape: f32[1,256], index: 4, kind: input, shape index: {}]   ;;  %s2233_s5 = inlined_call_operand.vmem [shape: bf16[256,256], index: 5, kind: input, shape index: {}]   ;;  %s2234_s6 = inlined_call_operand.vmem [shape: f32[1,256], index: 6, kind: input, shape index: {}]   ;;  %s2235_s7 = inlined_call_operand.vmem [shape: bf16[256,256], index: 7, kind: input, shape index: {}]   ;;  %s2236_s8 = inlined_call_operand.vmem [shape: f32[1,256], index: 8, kind: input, shape index: {}]   ;;  %s2237_s9 = inlined_call_operand.vmem [shape: f32[16,256], index: 9, kind: output, shape index: {}]  }
   0x1 LB: > { %s1390_s10 = sadd.s32 4294967295, %s1741_s30   ;;  %p1394_p0 = scmp.ge.s32.totalorder %s1741_s30, 1  ;;  %s1741_s30 = sphi %s1793_s30, %s19_s30  }
   0x2   : > { %p287_p1 = scmp.lt.s32.totalorder %s1741_s30, 3 }
   0x4   : > { %p288_p2 = pnand %p1394_p0, %p287_p1 }
   0x5   : > { %v1541_v0 = vld [vmem:[%s2229_s1 + $0x4] ss:$8 sps:$4 sm:$0xff] (!%p288_p2)   ;;  %v1543_v1 = vld [vmem:[%s2229_s1] ss:$8 sps:$4 sm:$0xff] (!%p288_p2)   ;;  %v1544_v2 = vld [vmem:[%s2229_s1 + $0x14] ss:$8 sps:$4 sm:$0xff] (!%p288_p2)  }
   0x6   : > { %291 = sbr.rel (%p288_p2) target bundleno = 946 (0x3b2), region = 56  ;;  %545 = vmatprep.subr.bf16.mxu0 (!%p288_p2), %v1541_v0  ;;  %v1546_v3 = vld [vmem:[%s2229_s1 + $0x10] ss:$8 sps:$4 sm:$0xff] (!%p288_p2)   ;;  %v1547_v4 = vld [vmem:[%s2229_s1 + $0x24] ss:$8 sps:$4 sm:$0xff] (!%p288_p2)   ;;  %p323_p3 = scmp.lt.s32.totalorder (!%p288_p2), %s1390_s10, 1 }
   0x7   : > { %546 = vmatpush1.bf16.msra.mxu0 (!%p288_p2), %v1543_v1  ;;  %v1549_v5 = vld [vmem:[%s2229_s1 + $0x20] ss:$8 sps:$4 sm:$0xff] (!%p288_p2)   ;;  %v1550_v6 = vld [vmem:[%s2229_s1 + $0x34] ss:$8 sps:$4 sm:$0xff] (!%p288_p2)   ;;  %v1552_v7 = vld [vmem:[%s2229_s1 + $0x30] ss:$8 sps:$4 sm:$0xff] (!%p288_p2)  }
   0x8   : > { %547 = vmatprep.subr.bf16.mxu0 (!%p288_p2), %v1544_v2  ;;  %v1553_v8 = vld [vmem:[%s2229_s1 + $0x44] ss:$8 sps:$4 sm:$0xff] (!%p288_p2)   ;;  %v1555_v9 = vld [vmem:[%s2229_s1 + $0x40] ss:$8 sps:$4 sm:$0xff] (!%p288_p2)   ;;  %v1556_v10 = vld [vmem:[%s2229_s1 + $0x54] ss:$8 sps:$4 sm:$0xff] (!%p288_p2)  }
   0x9   : > { %v1558_v11 = vld [vmem:[%s2229_s1 + $0x50] ss:$8 sps:$4 sm:$0xff] (!%p288_p2)   ;;  %v1559_v12 = vld [vmem:[%s2229_s1 + $0x64] ss:$8 sps:$4 sm:$0xff] (!%p288_p2)   ;;  %v1561_v13 = vld [vmem:[%s2229_s1 + $0x60] ss:$8 sps:$4 sm:$0xff] (!%p288_p2)  }
   0xa   : > { %v1591_v16 = vld [vmem:[%s2231_s3 + $0x4] ss:$8 sps:$4 sm:$0xff] (!%p288_p2)   ;;  %v1593_v17 = vld [vmem:[%s2231_s3] ss:$8 sps:$4 sm:$0xff] (!%p288_p2)   ;;  %v1594_v18 = vld [vmem:[%s2231_s3 + $0x14] ss:$8 sps:$4 sm:$0xff] (!%p288_p2)  }
   0xb   : > { %548 = vmatpush1.bf16.msra.mxu0 (!%p288_p2), %v1546_v3  ;;  %v1562_v19 = vld [vmem:[%s2229_s1 + $0x74] ss:$8 sps:$4 sm:$0xff] (!%p288_p2)   ;;  %794 = vmatprep.subr.bf16.mxu1 (!%p288_p2), %v1591_v16  ;;  %v1564_v20 = vld [vmem:[%s2229_s1 + $0x70] ss:$8 sps:$4 sm:$0xff] (!%p288_p2)   ;;  %v1597_v22 = vld [vmem:[%s2231_s3 + $0x24] ss:$8 sps:$4 sm:$0xff] (!%p288_p2)  }
   0xc   : > { %549 = vmatprep.subr.bf16.mxu0 (!%p288_p2), %v1547_v4  ;;  %795 = vmatpush1.bf16.msra.mxu1 (!%p288_p2), %v1593_v17  ;;  %v1596_v21 = vld [vmem:[%s2231_s3 + $0x10] ss:$8 sps:$4 sm:$0xff] (!%p288_p2)   ;;  %v1565_v23 = vld [vmem:[%s2229_s1 + $0x84] ss:$8 sps:$4 sm:$0xff] (!%p288_p2)   ;;  %v1567_v24 = vld [vmem:[%s2229_s1 + $0x80] ss:$8 sps:$4 sm:$0xff] (!%p288_p2)  }
   0xd   : > { %s2239_s10 = smov (!%p323_p3, %s1390_s10), 1  ;;  %796 = vmatprep.subr.bf16.mxu1 %v1594_v18  ;;  %v1599_v25 = vld [vmem:[%s2231_s3 + $0x20] ss:$8 sps:$4 sm:$0xff]   ;;  %v1600_v26 = vld [vmem:[%s2231_s3 + $0x34] ss:$8 sps:$4 sm:$0xff]  }
   0xe   : > { %s1531_s12 = sshll.u32 %s2239_s10, 3  ;;  %v1568_v27 = vld [vmem:[%s2229_s1 + $0x94] ss:$8 sps:$4 sm:$0xff]   ;;  %v1570_v28 = vld [vmem:[%s2229_s1 + $0x90] ss:$8 sps:$4 sm:$0xff]   ;;  %s1532_s13 = sshll.u32 %s2239_s10, 4 }
   0xf   : > { %550 = vmatpush1.bf16.msra.mxu0 %v1549_v5  ;;  %s327_s17 = scalar_lea.vmem %s2228_s0, %s1531_s12  ;;  %v1602_v29 = vld [vmem:[%s2231_s3 + $0x30] ss:$8 sps:$4 sm:$0xff]   ;;  %v1603_v30 = vld [vmem:[%s2231_s3 + $0x44] ss:$8 sps:$4 sm:$0xff]   ;;  %v1573_v32 = vld [vmem:[%s2229_s1 + $0xa0] ss:$8 sps:$4 sm:$0xff]   ;;  %s332_s16 = scalar_lea.vmem %s2237_s9, %s1532_s13 }
  0x10   : > { %551 = vmatprep.subr.bf16.mxu0 %v1550_v6  ;;  %v1849_v14 = vld [vmem:[%s327_s17] sm:$0xff]  ;;  %797 = vmatpush1.bf16.msra.mxu1 %v1596_v21  ;;  %v1606_v34 = vld [vmem:[%s2231_s3 + $0x54] ss:$8 sps:$4 sm:$0xff]   ;;  %v1608_v36 = vld [vmem:[%s2231_s3 + $0x50] ss:$8 sps:$4 sm:$0xff]  }
  0x11   : > { %v1400_v15 = vcombine.high %v1849_v14, %v1849_v14  ;;  %798 = vmatprep.subr.bf16.mxu1 %v1597_v22  ;;  %v1571_v31 = vld [vmem:[%s2229_s1 + $0xa4] ss:$8 sps:$4 sm:$0xff]   ;;  %v1605_v33 = vld [vmem:[%s2231_s3 + $0x40] ss:$8 sps:$4 sm:$0xff]   ;;  %v1574_v35 = vld [vmem:[%s2229_s1 + $0xb4] ss:$8 sps:$4 sm:$0xff]   ;;  %v1399_v56 = vcombine.low %v1849_v14, %v1849_v14 }
  0x12   : > { %v1576_v37 = vld [vmem:[%s2229_s1 + $0xb0] ss:$8 sps:$4 sm:$0xff]   ;;  %v1609_v38 = vld [vmem:[%s2231_s3 + $0x64] ss:$8 sps:$4 sm:$0xff]   ;;  %v1611_v40 = vld [vmem:[%s2231_s3 + $0x60] ss:$8 sps:$4 sm:$0xff]  }
  0x13   : > { %552 = vmatpush1.bf16.msra.mxu0 %v1552_v7  ;;  %577 = vmatprep.mubr.bf16.mxu0 %v1400_v15  ;;  %v1577_v39 = vld [vmem:[%s2229_s1 + $0xc4] ss:$8 sps:$4 sm:$0xff]   ;;  %v1579_v41 = vld [vmem:[%s2229_s1 + $0xc0] ss:$8 sps:$4 sm:$0xff]   ;;  %v1612_v42 = vld [vmem:[%s2231_s3 + $0x74] ss:$8 sps:$4 sm:$0xff]  }
  0x14   : > { %553 = vmatprep.subr.bf16.mxu0 %v1553_v8  ;;  %799 = vmatpush1.bf16.msra.mxu1 %v1599_v25  ;;  %v1580_v43 = vld [vmem:[%s2229_s1 + $0xd4] ss:$8 sps:$4 sm:$0xff]   ;;  %v1614_v44 = vld [vmem:[%s2231_s3 + $0x70] ss:$8 sps:$4 sm:$0xff]   ;;  %v1615_v46 = vld [vmem:[%s2231_s3 + $0x84] ss:$8 sps:$4 sm:$0xff]  }
  0x15   : > { %800 = vmatprep.subr.bf16.mxu1 %v1600_v26  ;;  %v1582_v45 = vld [vmem:[%s2229_s1 + $0xd0] ss:$8 sps:$4 sm:$0xff]   ;;  %v1583_v47 = vld [vmem:[%s2229_s1 + $0xe4] ss:$8 sps:$4 sm:$0xff]   ;;  %v1617_v48 = vld [vmem:[%s2231_s3 + $0x80] ss:$8 sps:$4 sm:$0xff]  }
  0x16   : > { %v1585_v49 = vld [vmem:[%s2229_s1 + $0xe0] ss:$8 sps:$4 sm:$0xff]   ;;  %v1618_v50 = vld [vmem:[%s2231_s3 + $0x94] ss:$8 sps:$4 sm:$0xff]   ;;  %v1620_v52 = vld [vmem:[%s2231_s3 + $0x90] ss:$8 sps:$4 sm:$0xff]  }
  0x17   : > { %554 = vmatpush1.bf16.msra.mxu0 %v1555_v9  ;;  %v1586_v51 = vld [vmem:[%s2229_s1 + $0xf4] ss:$8 sps:$4 sm:$0xff]   ;;  %v1588_v53 = vld [vmem:[%s2229_s1 + $0xf0] ss:$8 sps:$4 sm:$0xff]   ;;  %v1621_v54 = vld [vmem:[%s2231_s3 + $0xa4] ss:$8 sps:$4 sm:$0xff]  }
  0x18   : > { %555 = vmatprep.subr.bf16.mxu0 %v1556_v10  ;;  %801 = vmatpush1.bf16.msra.mxu1 %v1602_v29  ;;  %v1623_v55 = vld [vmem:[%s2231_s3 + $0xa0] ss:$8 sps:$4 sm:$0xff]   ;;  %v1624_v57 = vld [vmem:[%s2231_s3 + $0xb4] ss:$8 sps:$4 sm:$0xff]   ;;  %v1626_v58 = vld [vmem:[%s2231_s3 + $0xb0] ss:$8 sps:$4 sm:$0xff]  }
  0x19   : > { %802 = vmatprep.subr.bf16.mxu1 %v1603_v30  ;;  %v1627_v59 = vld [vmem:[%s2231_s3 + $0xc4] ss:$8 sps:$4 sm:$0xff]   ;;  %v1629_v60 = vld [vmem:[%s2231_s3 + $0xc0] ss:$8 sps:$4 sm:$0xff]   ;;  %v1630_v61 = vld [vmem:[%s2231_s3 + $0xd4] ss:$8 sps:$4 sm:$0xff]  }
  0x1a   : > { %v1632_v62 = vld [vmem:[%s2231_s3 + $0xd0] ss:$8 sps:$4 sm:$0xff]   ;;  %v1633_v63 = vld [vmem:[%s2231_s3 + $0xe4] ss:$8 sps:$4 sm:$0xff]   ;;  %v1635_v0 = vld [vmem:[%s2231_s3 + $0xe0] ss:$8 sps:$4 sm:$0xff]  }
  0x1b   : > { %556 = vmatpush1.bf16.msra.mxu0 %v1558_v11  ;;  %v1636_v1 = vld [vmem:[%s2231_s3 + $0xf4] ss:$8 sps:$4 sm:$0xff]   ;;  %v1638_v2 = vld [vmem:[%s2231_s3 + $0xf0] ss:$8 sps:$4 sm:$0xff]   ;;  %v1639_v3 = vld [vmem:[%s2233_s5] ss:$8 sps:$4 sm:$0xff]  }
  0x1c   : > { %557 = vmatprep.subr.bf16.mxu0 %v1559_v12  ;;  %803 = vmatpush1.bf16.msra.mxu1 %v1605_v33  ;;  %v1641_v4 = vld [vmem:[%s2233_s5 + $0x4] ss:$8 sps:$4 sm:$0xff]   ;;  %v1644_v5 = vld [vmem:[%s2233_s5 + $0x14] ss:$8 sps:$4 sm:$0xff]   ;;  %v1642_v6 = vld [vmem:[%s2233_s5 + $0x10] ss:$8 sps:$4 sm:$0xff]  }
  0x1d   : > { %804 = vmatprep.subr.bf16.mxu1 %v1606_v34  ;;  %v1647_v7 = vld [vmem:[%s2233_s5 + $0x24] ss:$8 sps:$4 sm:$0xff]   ;;  %v1645_v8 = vld [vmem:[%s2233_s5 + $0x20] ss:$8 sps:$4 sm:$0xff]   ;;  %v1650_v9 = vld [vmem:[%s2233_s5 + $0x34] ss:$8 sps:$4 sm:$0xff]  }
  0x1e   : > { %v1648_v10 = vld [vmem:[%s2233_s5 + $0x30] ss:$8 sps:$4 sm:$0xff]   ;;  %v1653_v11 = vld [vmem:[%s2233_s5 + $0x44] ss:$8 sps:$4 sm:$0xff]   ;;  %v1651_v12 = vld [vmem:[%s2233_s5 + $0x40] ss:$8 sps:$4 sm:$0xff]  }
  0x1f   : > { %558 = vmatpush1.bf16.msra.mxu0 %v1561_v13  ;;  %v1656_v13 = vld [vmem:[%s2233_s5 + $0x54] ss:$8 sps:$4 sm:$0xff]   ;;  %v1654_v14 = vld [vmem:[%s2233_s5 + $0x50] ss:$8 sps:$4 sm:$0xff]   ;;  %v1659_v15 = vld [vmem:[%s2233_s5 + $0x64] ss:$8 sps:$4 sm:$0xff]  }
  0x20   : > { %559 = vmatprep.subr.bf16.mxu0 %v1562_v19  ;;  %805 = vmatpush1.bf16.msra.mxu1 %v1608_v36  ;;  %v1657_v16 = vld [vmem:[%s2233_s5 + $0x60] ss:$8 sps:$4 sm:$0xff]   ;;  %v1662_v17 = vld [vmem:[%s2233_s5 + $0x74] ss:$8 sps:$4 sm:$0xff]   ;;  %v1660_v18 = vld [vmem:[%s2233_s5 + $0x70] ss:$8 sps:$4 sm:$0xff]  }
  0x21   : > { %806 = vmatprep.subr.bf16.mxu1 %v1609_v38  ;;  %v1665_v19 = vld [vmem:[%s2233_s5 + $0x84] ss:$8 sps:$4 sm:$0xff]   ;;  %v1668_v21 = vld [vmem:[%s2233_s5 + $0x94] ss:$8 sps:$4 sm:$0xff]   ;;  %v1666_v22 = vld [vmem:[%s2233_s5 + $0x90] ss:$8 sps:$4 sm:$0xff]  }
  0x22   : > { %v1674_v25 = vld [vmem:[%s2233_s5 + $0xb4] ss:$8 sps:$4 sm:$0xff]   ;;  %v1672_v26 = vld [vmem:[%s2233_s5 + $0xb0] ss:$8 sps:$4 sm:$0xff]   ;;  %v366_v34 = vld [vmem:[%s2230_s2] sm:$0x3] }
  0x23   : > { %560 = vmatpush1.bf16.msra.mxu0 %v1564_v20  ;;  %v1663_v20 = vld [vmem:[%s2233_s5 + $0x80] ss:$8 sps:$4 sm:$0xff]   ;;  %v1680_v29 = vld [vmem:[%s2233_s5 + $0xd4] ss:$8 sps:$4 sm:$0xff]   ;;  %v1678_v30 = vld [vmem:[%s2233_s5 + $0xd0] ss:$8 sps:$4 sm:$0xff]  }
  0x24   : > { %561 = vmatprep.subr.bf16.mxu0 %v1565_v23  ;;  %807 = vmatpush1.bf16.msra.mxu1 %v1611_v40  ;;  %v1671_v23 = vld [vmem:[%s2233_s5 + $0xa4] ss:$8 sps:$4 sm:$0xff]  }
  0x25   : > { %808 = vmatprep.subr.bf16.mxu1 %v1612_v42 }
  0x27   : > { %562 = vmatpush1.bf16.msra.mxu0 %v1567_v24  ;;  %v1669_v24 = vld [vmem:[%s2233_s5 + $0xa0] ss:$8 sps:$4 sm:$0xff]  }
  0x28   : > { %563 = vmatprep.subr.bf16.mxu0 %v1568_v27  ;;  %809 = vmatpush1.bf16.msra.mxu1 %v1614_v44  ;;  %v1677_v27 = vld [vmem:[%s2233_s5 + $0xc4] ss:$8 sps:$4 sm:$0xff]  }
  0x29   : > { %810 = vmatprep.subr.bf16.mxu1 %v1615_v46 }
  0x2b   : > { %564 = vmatpush1.bf16.msra.mxu0 %v1570_v28  ;;  %v1675_v28 = vld [vmem:[%s2233_s5 + $0xc0] ss:$8 sps:$4 sm:$0xff]  }
  0x2c   : > { %565 = vmatprep.subr.bf16.mxu0 %v1571_v31  ;;  %811 = vmatpush1.bf16.msra.mxu1 %v1617_v48  ;;  %v368_v31 = vlaneseq  ;;  %v1683_v48 = vld [vmem:[%s2233_s5 + $0xe4] ss:$8 sps:$4 sm:$0xff]  }
  0x2d   : > { %812 = vmatprep.subr.bf16.mxu1 %v1618_v50  ;;  %v1686_v50 = vld [vmem:[%s2233_s5 + $0xf4] ss:$8 sps:$4 sm:$0xff]  }
  0x2f   : > { %566 = vmatpush1.bf16.msra.mxu0 %v1573_v32  ;;  %v369_v32 = vshrl.u32 %v368_v31, 7  ;;  %v1734_v31 = vld [vmem:[%s2235_s7 + $0xf4] ss:$8 sps:$4 sm:$0xff]  }
  0x30   : > { %567 = vmatprep.subr.bf16.mxu0 %v1574_v35  ;;  %813 = vmatpush1.bf16.msra.mxu1 %v1620_v52  ;;  %v1687_v52 = vld [vmem:[%s2235_s7] ss:$8 sps:$4 sm:$0xff]  }
  0x31   : > { %814 = vmatprep.subr.bf16.mxu1 %v1621_v54  ;;  %v2089_v33 = vsub.s32 0, %v369_v32  ;;  %v2094_v35 = vsub.s32 1, %v369_v32  ;;  %v1692_v54 = vld [vmem:[%s2235_s7 + $0x14] ss:$8 sps:$4 sm:$0xff]   ;;  %v1732_v32 = vld [vmem:[%s2235_s7 + $0xf0] ss:$8 sps:$4 sm:$0xff]  }
  0x33   : > { %568 = vmatpush1.bf16.msra.mxu0 %v1576_v37  ;;  %v371_v36 = vrot.slane %v366_v34, %v2089_v33  ;;  %v375_v37 = vrot.slane %v366_v34, %v2094_v35  ;;  %v871_v34 = vld [vmem:[%s2234_s6] sm:$0x3] }
  0x34   : > { %569 = vmatprep.subr.bf16.mxu0 %v1577_v39  ;;  %815 = vmatpush1.bf16.msra.mxu1 %v1623_v55  ;;  %v1690_v55 = vld [vmem:[%s2235_s7 + $0x10] ss:$8 sps:$4 sm:$0xff]  }
  0x35   : > { %816 = vmatprep.subr.bf16.mxu1 %v1624_v57  ;;  %v1693_v57 = vld [vmem:[%s2235_s7 + $0x20] ss:$8 sps:$4 sm:$0xff]  }
  0x37   : > { %570 = vmatpush1.bf16.msra.mxu0 %v1579_v41 }
  0x38   : > { %571 = vmatprep.subr.bf16.mxu0 %v1580_v43  ;;  %817 = vmatpush1.bf16.msra.mxu1 %v1626_v58  ;;  %v1698_v58 = vld [vmem:[%s2235_s7 + $0x34] ss:$8 sps:$4 sm:$0xff]  }
  0x39   : > { %818 = vmatprep.subr.bf16.mxu1 %v1627_v59  ;;  %v1696_v59 = vld [vmem:[%s2235_s7 + $0x30] ss:$8 sps:$4 sm:$0xff]  }
  0x3b   : > { %572 = vmatpush1.bf16.msra.mxu0 %v1582_v45 }
  0x3c   : > { %573 = vmatprep.subr.bf16.mxu0 %v1583_v47  ;;  %819 = vmatpush1.bf16.msra.mxu1 %v1629_v60  ;;  %v1701_v60 = vld [vmem:[%s2235_s7 + $0x44] ss:$8 sps:$4 sm:$0xff]  }
  0x3d   : > { %820 = vmatprep.subr.bf16.mxu1 %v1630_v61  ;;  %v1699_v61 = vld [vmem:[%s2235_s7 + $0x40] ss:$8 sps:$4 sm:$0xff]  }
  0x3f   : > { %574 = vmatpush1.bf16.msra.mxu0 %v1585_v49  ;;  %v1681_v49 = vld [vmem:[%s2233_s5 + $0xe0] ss:$8 sps:$4 sm:$0xff]  }
  0x40   : > { %575 = vmatprep.subr.bf16.mxu0 %v1586_v51  ;;  %821 = vmatpush1.bf16.msra.mxu1 %v1632_v62  ;;  %v1684_v51 = vld [vmem:[%s2233_s5 + $0xf0] ss:$8 sps:$4 sm:$0xff]   ;;  %v1704_v62 = vld [vmem:[%s2235_s7 + $0x54] ss:$8 sps:$4 sm:$0xff]  }
  0x41   : > { %822 = vmatprep.subr.bf16.mxu1 %v1633_v63  ;;  %v1702_v63 = vld [vmem:[%s2235_s7 + $0x50] ss:$8 sps:$4 sm:$0xff]  }
  0x43   : > { %576 = vmatpush1.bf16.msra.mxu0 %v1588_v53  ;;  %v1689_v53 = vld [vmem:[%s2235_s7 + $0x4] ss:$8 sps:$4 sm:$0xff]  }
  0x44   : > { %823 = vmatpush1.bf16.msra.mxu1 %v1635_v0  ;;  %1043 = vmatprep.subr.bf16.mxu0 %v1641_v4  ;;  %v1707_v0 = vld [vmem:[%s2235_s7 + $0x64] ss:$8 sps:$4 sm:$0xff]  }
  0x45   : > { %824 = vmatprep.subr.bf16.mxu1 %v1636_v1  ;;  %v1705_v1 = vld [vmem:[%s2235_s7 + $0x60] ss:$8 sps:$4 sm:$0xff]   ;;  %v1713_v4 = vld [vmem:[%s2235_s7 + $0x84] ss:$8 sps:$4 sm:$0xff]  }
  0x46   : > { %578 = vmatmul.mubr.bf16.vlgmr.msra.gmra.mrb[0].mxu0 %v1399_v56  ;;  %v1695_v56 = vld [vmem:[%s2235_s7 + $0x24] ss:$8 sps:$4 sm:$0xff]  }
  0x47   : > { %1044 = vmatpush1.bf16.msra.mxu0 %v1639_v3  ;;  %v1708_v3 = vld [vmem:[%s2235_s7 + $0x70] ss:$8 sps:$4 sm:$0xff]  }
  0x48   : > { %825 = vmatpush1.bf16.msra.mxu1 %v1638_v2  ;;  %1045 = vmatprep.subr.bf16.mxu0 %v1644_v5  ;;  %v1710_v2 = vld [vmem:[%s2235_s7 + $0x74] ss:$8 sps:$4 sm:$0xff]   ;;  %v1711_v5 = vld [vmem:[%s2235_s7 + $0x80] ss:$8 sps:$4 sm:$0xff]  }
  0x49   : > { %1292 = vmatprep.subr.bf16.mxu1 %v1689_v53 }
  0x4b   : > { %1046 = vmatpush1.bf16.msra.mxu0 %v1642_v6  ;;  %v1716_v6 = vld [vmem:[%s2235_s7 + $0x94] ss:$8 sps:$4 sm:$0xff]  }
  0x4c   : > { %1047 = vmatprep.subr.bf16.mxu0 %v1647_v7  ;;  %v1714_v7 = vld [vmem:[%s2235_s7 + $0x90] ss:$8 sps:$4 sm:$0xff]  }
  0x4f   : > { %1048 = vmatpush1.bf16.msra.mxu0 %v1645_v8  ;;  %v1719_v8 = vld [vmem:[%s2235_s7 + $0xa4] ss:$8 sps:$4 sm:$0xff]  }
  0x50   : > { %1049 = vmatprep.subr.bf16.mxu0 %v1650_v9  ;;  %v1717_v9 = vld [vmem:[%s2235_s7 + $0xa0] ss:$8 sps:$4 sm:$0xff]  }
  0x53   : > { %1050 = vmatpush1.bf16.msra.mxu0 %v1648_v10  ;;  %v1722_v10 = vld [vmem:[%s2235_s7 + $0xb4] ss:$8 sps:$4 sm:$0xff]  }
  0x54   : > { %1051 = vmatprep.subr.bf16.mxu0 %v1653_v11  ;;  %v1720_v11 = vld [vmem:[%s2235_s7 + $0xb0] ss:$8 sps:$4 sm:$0xff]  }
  0x57   : > { %1052 = vmatpush1.bf16.msra.mxu0 %v1651_v12  ;;  %v1725_v12 = vld [vmem:[%s2235_s7 + $0xc4] ss:$8 sps:$4 sm:$0xff]  }
  0x58   : > { %1053 = vmatprep.subr.bf16.mxu0 %v1656_v13  ;;  %v1723_v13 = vld [vmem:[%s2235_s7 + $0xc0] ss:$8 sps:$4 sm:$0xff]  }
  0x5b   : > { %1054 = vmatpush1.bf16.msra.mxu0 %v1654_v14  ;;  %v1728_v14 = vld [vmem:[%s2235_s7 + $0xd4] ss:$8 sps:$4 sm:$0xff]  }
  0x5c   : > { %1055 = vmatprep.subr.bf16.mxu0 %v1659_v15  ;;  %v1726_v15 = vld [vmem:[%s2235_s7 + $0xd0] ss:$8 sps:$4 sm:$0xff]  }
  0x5f   : > { %1056 = vmatpush1.bf16.msra.mxu0 %v1657_v16  ;;  %v622_v16 = vld [vmem:[%s2232_s4] sm:$0x3] }
  0x60   : > { %1057 = vmatprep.subr.bf16.mxu0 %v1662_v17  ;;  %v627_v17 = vrot.slane %v622_v16, %v2089_v33 }
  0x63   : > { %1058 = vmatpush1.bf16.msra.mxu0 %v1660_v18  ;;  %v631_v18 = vrot.slane %v622_v16, %v2094_v35 }
  0x64   : > { %1059 = vmatprep.subr.bf16.mxu0 %v1665_v19 }
  0x67   : > { %1060 = vmatpush1.bf16.msra.mxu0 %v1663_v20 }
  0x68   : > { %1061 = vmatprep.subr.bf16.mxu0 %v1668_v21 }
  0x6b   : > { %1062 = vmatpush1.bf16.msra.mxu0 %v1666_v22 }
  0x6c   : > { %1063 = vmatprep.subr.bf16.mxu0 %v1671_v23 }
  0x6f   : > { %1064 = vmatpush1.bf16.msra.mxu0 %v1669_v24 }
  0x70   : > { %1065 = vmatprep.subr.bf16.mxu0 %v1674_v25 }
  0x73   : > { %1066 = vmatpush1.bf16.msra.mxu0 %v1672_v26 }
  0x74   : > { %1067 = vmatprep.subr.bf16.mxu0 %v1677_v27 }
  0x77   : > { %1068 = vmatpush1.bf16.msra.mxu0 %v1675_v28 }
  0x78   : > { %1069 = vmatprep.subr.bf16.mxu0 %v1680_v29  ;;  %v1731_v29 = vld [vmem:[%s2235_s7 + $0xe4] ss:$8 sps:$4 sm:$0xff]  }
  0x7b   : > { %1070 = vmatpush1.bf16.msra.mxu0 %v1678_v30  ;;  %v1729_v30 = vld [vmem:[%s2235_s7 + $0xe0] ss:$8 sps:$4 sm:$0xff]  }
  0x7c   : > { %1071 = vmatprep.subr.bf16.mxu0 %v1683_v48  ;;  %v1120_v48 = vld [vmem:[%s2236_s8] sm:$0x3] }
  0x7f   : > { %1072 = vmatpush1.bf16.msra.mxu0 %v1681_v49  ;;  %v1125_v49 = vrot.slane %v1120_v48, %v2089_v33 }
  0x80   : > { %1073 = vmatprep.subr.bf16.mxu0 %v1686_v50  ;;  %v1129_v50 = vrot.slane %v1120_v48, %v2094_v35 }
  0x83   : > { %1074 = vmatpush1.bf16.msra.mxu0 %v1684_v51 }
 0x119   : > { %v579_v38 = vpop.f32.mrb[0].mxu0 }
 0x11a   : > { %v580_v39 = vadd.f32 %v579_v38, %v371_v36  ;;  %v581_v40 = vpop.f32.mrb[1].mxu0  ;;  %v876_v36 = vrot.slane %v871_v34, %v2089_v33 }
 0x11b   : > { %v582_v41 = vadd.f32 %v581_v40, %v375_v37  ;;  %v583_v42 = vpop.f32.mrb[2].mxu0  ;;  %v880_v37 = vrot.slane %v871_v34, %v2094_v35 }
 0x11c   : > { %v586_v43 = vmax.f32 %v580_v39, 0.0  ;;  %v584_v44 = vpop.f32.mrb[3].mxu0 }
 0x11d   : > { %v587_v45 = vmax.f32 %v582_v41, 0.0 }
 0x11e   : > { %v588_v47 = vpack.c.bf16 %v586_v43, %v586_v43 }
 0x11f   : > { %v589_v46 = vpack.c.bf16 %v587_v45, %v587_v45 }
 0x121   : > { %826 = vmatprep.mubr.bf16.mxu1 %v589_v46 }
 0x122   : > { %827 = vmatmul.mubr.bf16.vlgmr.msra.gmra.mrb[0].mxu1 %v588_v47 }
 0x123   : > { %1293 = vmatpush1.bf16.msra.mxu1 %v1687_v52 }
 0x124   : > { %1294 = vmatprep.subr.bf16.mxu1 %v1692_v54 }
 0x127   : > { %1295 = vmatpush1.bf16.msra.mxu1 %v1690_v55 }
 0x128   : > { %1296 = vmatprep.subr.bf16.mxu1 %v1695_v56 }
 0x12b   : > { %1297 = vmatpush1.bf16.msra.mxu1 %v1693_v57 }
 0x12c   : > { %1298 = vmatprep.subr.bf16.mxu1 %v1698_v58 }
 0x12f   : > { %1299 = vmatpush1.bf16.msra.mxu1 %v1696_v59 }
 0x130   : > { %1300 = vmatprep.subr.bf16.mxu1 %v1701_v60 }
 0x133   : > { %1301 = vmatpush1.bf16.msra.mxu1 %v1699_v61 }
 0x134   : > { %1302 = vmatprep.subr.bf16.mxu1 %v1704_v62 }
 0x137   : > { %1303 = vmatpush1.bf16.msra.mxu1 %v1702_v63 }
 0x138   : > { %1304 = vmatprep.subr.bf16.mxu1 %v1707_v0 }
 0x13b   : > { %1305 = vmatpush1.bf16.msra.mxu1 %v1705_v1 }
 0x13c   : > { %1306 = vmatprep.subr.bf16.mxu1 %v1710_v2 }
 0x13f   : > { %1307 = vmatpush1.bf16.msra.mxu1 %v1708_v3 }
 0x140   : > { %1308 = vmatprep.subr.bf16.mxu1 %v1713_v4 }
 0x143   : > { %1309 = vmatpush1.bf16.msra.mxu1 %v1711_v5 }
 0x144   : > { %1310 = vmatprep.subr.bf16.mxu1 %v1716_v6 }
 0x147   : > { %1311 = vmatpush1.bf16.msra.mxu1 %v1714_v7 }
 0x148   : > { %1312 = vmatprep.subr.bf16.mxu1 %v1719_v8 }
 0x14b   : > { %1313 = vmatpush1.bf16.msra.mxu1 %v1717_v9 }
 0x14c   : > { %1314 = vmatprep.subr.bf16.mxu1 %v1722_v10 }
 0x14f   : > { %1315 = vmatpush1.bf16.msra.mxu1 %v1720_v11 }
 0x150   : > { %1316 = vmatprep.subr.bf16.mxu1 %v1725_v12 }
 0x153   : > { %1317 = vmatpush1.bf16.msra.mxu1 %v1723_v13 }
 0x154   : > { %1318 = vmatprep.subr.bf16.mxu1 %v1728_v14 }
 0x157   : > { %1319 = vmatpush1.bf16.msra.mxu1 %v1726_v15 }
 0x158   : > { %1320 = vmatprep.subr.bf16.mxu1 %v1731_v29 }
 0x15b   : > { %1321 = vmatpush1.bf16.msra.mxu1 %v1729_v30 }
 0x15c   : > { %1322 = vmatprep.subr.bf16.mxu1 %v1734_v31 }
 0x15f   : > { %1323 = vmatpush1.bf16.msra.mxu1 %v1732_v32 }
 0x1f5   : > { %v828_v19 = vpop.f32.mrb[0].mxu1 }
 0x1f6   : > { %v829_v20 = vadd.f32 %v828_v19, %v627_v17  ;;  %v830_v21 = vpop.f32.mrb[1].mxu1 }
 0x1f7   : > { %v831_v22 = vadd.f32 %v830_v21, %v631_v18  ;;  %v832_v23 = vpop.f32.mrb[2].mxu1 }
 0x1f8   : > { %v835_v24 = vmax.f32 %v829_v20, 0.0  ;;  %v833_v25 = vpop.f32.mrb[3].mxu1 }
 0x1f9   : > { %v836_v26 = vmax.f32 %v831_v22, 0.0 }
 0x1fa   : > { %v837_v28 = vpack.c.bf16 %v835_v24, %v835_v24 }
 0x1fb   : > { %v838_v27 = vpack.c.bf16 %v836_v26, %v836_v26 }
 0x1fd   : > { %1075 = vmatprep.mubr.bf16.mxu0 %v838_v27 }
 0x1fe   : > { %1076 = vmatmul.mubr.bf16.vlgmr.msra.gmra.mrb[4].mxu0 %v837_v28 }
 0x2d1   : > { %v1077_v38 = vpop.f32.mrb[4].mxu0 }
 0x2d2   : > { %v1078_v39 = vadd.f32 %v1077_v38, %v876_v36  ;;  %v1079_v40 = vpop.f32.mrb[5].mxu0 }
 0x2d3   : > { %v1080_v41 = vadd.f32 %v1079_v40, %v880_v37  ;;  %v1081_v42 = vpop.f32.mrb[6].mxu0 }
 0x2d4   : > { %v1084_v43 = vmax.f32 %v1078_v39, 0.0  ;;  %v1082_v44 = vpop.f32.mrb[7].mxu0 }
 0x2d5   : > { %v1085_v45 = vmax.f32 %v1080_v41, 0.0 }
 0x2d6   : > { %v1086_v47 = vpack.c.bf16 %v1084_v43, %v1084_v43 }
 0x2d7   : > { %v1087_v46 = vpack.c.bf16 %v1085_v45, %v1085_v45 }
 0x2d9   : > { %1324 = vmatprep.mubr.bf16.mxu1 %v1087_v46 }
 0x2da   : > { %1325 = vmatmul.mubr.bf16.vlgmr.msra.gmra.mrb[4].mxu1 %v1086_v47 }
 0x3ad   : > { %v1326_v51 = vpop.f32.mrb[4].mxu1 }
 0x3ae   : > { %v1327_v52 = vadd.f32 %v1326_v51, %v1125_v49  ;;  %v1328_v53 = vpop.f32.mrb[5].mxu1 }
 0x3af   : > { %v1329_v54 = vadd.f32 %v1328_v53, %v1129_v50  ;;  %v1330_v55 = vpop.f32.mrb[6].mxu1 }
 0x3b0   : > { %1333 = vst [vmem:[%s332_s16] sm:$0xff] %v1327_v52  ;;  %v1331_v56 = vpop.f32.mrb[7].mxu1 }
 0x3b1   : > { %1334 = vst [vmem:[%s332_s16 + $0x8] sm:$0xff] %v1329_v54 }
 0x3b2 PF: > { %s19_s30 = sadd.s32 1, %s1741_s30  }
 0x3b3   : > { %p16_p4 = scmp.ge.s32.totalorder %s19_s30, 4  }
 0x3b5   :  { %18 = sbr.rel (!%p16_p4) target bundleno = 1 (0x1), region = 86 }

</bundles_post_ra>
